<compile_context>
chip_gen: v5e
topology: v5e:2x2
jax: 0.10.0
libtpu: 0.0.40
codegen_flags: <defaults>
</compile_context>

<pallas_src>
import jax
import jax.numpy as jnp
from jax.experimental import pallas as pl
from jax.experimental.pallas import tpu as pltpu

IN_F, H1, H2, OUT_F = 8, 6, 4, 1


def _mlp_kernel(x_ref, w1_ref, b1_ref, w2_ref, b2_ref, w3_ref, b3_ref, o_ref):
    """Fused 3-layer MLP in (features, batch-tile) layout.

    x_ref : (8, T)    activations, batch on lanes
    wK_ref: (out, in) weights (PyTorch nn.Linear layout)
    bK_ref: (out, 1)  biases
    o_ref : (1, T)
    """
    def layer(h, w_ref, b_ref):
        w = w_ref[...]                       # (O, K) - tiny, VMEM resident
        b = b_ref[...]                       # (O, 1)
        out_f, k_f = w.shape
        acc = jnp.broadcast_to(b, (out_f, h.shape[1]))
        # Unrolled VPU multiply-adds over the tiny contraction dim.
        for k in range(k_f):
            acc = acc + w[:, k:k + 1] * h[k:k + 1, :]
        return jax.nn.sigmoid(acc)           # exp/div go to the EUP slot

    h = x_ref[...]                           # (8, T) f32
    h = layer(h, w1_ref, b1_ref)             # (6, T)
    h = layer(h, w2_ref, b2_ref)             # (4, T)
    h = layer(h, w3_ref, b3_ref)             # (1, T)
    o_ref[...] = h.astype(o_ref.dtype)


def mlp_forward(x, params, tile_n=8192):
    """x: (N, 8) float32 -> (N, 1) float32. Weights in PyTorch (out, in) layout."""
    w1, b1, w2, b2, w3, b3 = params
    n = x.shape[0]

    # Pad N up to a 128-aligned tile so the batch sits lane-dense, then
    # transpose to (features, N) outside the kernel (layout plumbing only).
    n128 = ((n + 127) // 128) * 128
    tile = min(tile_n, n128)                 # tile is a multiple of 128
    n_pad = ((n + tile - 1) // tile) * tile
    xt = jnp.zeros((IN_F, n_pad), x.dtype).at[:, :n].set(x.T)

    grid = (n_pad // tile,)
    const = lambda a: pl.BlockSpec(a.shape, lambda i: (0, 0))  # stays resident

    out_t = pl.pallas_call(
        _mlp_kernel,
        out_shape=jax.ShapeDtypeStruct((OUT_F, n_pad), jnp.float32),
        grid=grid,
        in_specs=[
            pl.BlockSpec((IN_F, tile), lambda i: (0, i)),
            const(w1), const(b1),
            const(w2), const(b2),
            const(w3), const(b3),
        ],
        out_specs=pl.BlockSpec((OUT_F, tile), lambda i: (0, i)),
        compiler_params=pltpu.CompilerParams(
            dimension_semantics=("parallel",)),
        cost_estimate=pl.CostEstimate(
            flops=152 * n_pad,
            transcendentals=11 * n_pad,
            bytes_accessed=36 * n_pad),
    )(xt, w1, b1, w2, b2, w3, b3)

    return out_t[:, :n].T                    # back to (N, 1)


def init_params(key):
    """PyTorch nn.Linear default init: U(-1/sqrt(fan_in), 1/sqrt(fan_in)).
    Weights stored as (out_features, in_features), biases as (out, 1)."""
    sizes = [(IN_F, H1), (H1, H2), (H2, OUT_F)]
    params = []
    for fan_in, fan_out in sizes:
        key, kw, kb = jax.random.split(key, 3)
        bound = 1.0 / (fan_in ** 0.5)
        w = jax.random.uniform(kw, (fan_out, fan_in), jnp.float32, -bound, bound)
        b = jax.random.uniform(kb, (fan_out, 1), jnp.float32, -bound, bound)
        params += [w, b]
    return params


if __name__ == "__main__":
    key = jax.random.PRNGKey(0)
    key, kx = jax.random.split(key)
    x = jax.random.normal(kx, (8, 8), dtype=jnp.float32)  # batch=8, features=8

    params = init_params(key)

    out = mlp_forward(x, params)
    jax.block_until_ready(out)

    # Reference check in plain JAX (PyTorch semantics: y = x @ W.T + b).
    w1, b1, w2, b2, w3, b3 = params
    ref = jax.nn.sigmoid(x @ w1.T + b1.T)
    ref = jax.nn.sigmoid(ref @ w2.T + b2.T)
    ref = jax.nn.sigmoid(ref @ w3.T + b3.T)
    assert out.shape == (8, 1)
    assert jnp.allclose(out, ref, atol=1e-5, rtol=1e-5)

    print("KERNEL_OK")
</pallas_src>

<mosaic_0001>
module attributes {stable_mosaic.version = 11 : i64} {
  func.func @_mlp_kernel(%arg0: i32, %arg1: memref<8x128xf32, #tpu.memory_space<vmem>>, %arg2: memref<6x8xf32, #tpu.memory_space<vmem>>, %arg3: memref<6x1xf32, #tpu.memory_space<vmem>>, %arg4: memref<4x6xf32, #tpu.memory_space<vmem>>, %arg5: memref<4x1xf32, #tpu.memory_space<vmem>>, %arg6: memref<1x4xf32, #tpu.memory_space<vmem>>, %arg7: memref<1x1xf32, #tpu.memory_space<vmem>>, %arg8: memref<1x128xf32, #tpu.memory_space<vmem>>) attributes {dimension_semantics = [#tpu.dimension_semantics<parallel>], iteration_bounds = array<i64: 1>, scalar_prefetch = 0 : i64, scratch_operands = 0 : i64, tpu.core_type = #tpu.core_type<tc>, window_params = [{transform_indices = @transform_0, window_bounds = array<i64: 8, 128>}, {pipeline_mode = #tpu.pipeline_mode<synchronous>, transform_indices = @transform_1, window_bounds = array<i64: 6, 8>}, {pipeline_mode = #tpu.pipeline_mode<synchronous>, transform_indices = @transform_2, window_bounds = array<i64: 6, 1>}, {pipeline_mode = #tpu.pipeline_mode<synchronous>, transform_indices = @transform_3, window_bounds = array<i64: 4, 6>}, {pipeline_mode = #tpu.pipeline_mode<synchronous>, transform_indices = @transform_4, window_bounds = array<i64: 4, 1>}, {pipeline_mode = #tpu.pipeline_mode<synchronous>, transform_indices = @transform_5, window_bounds = array<i64: 1, 4>}, {pipeline_mode = #tpu.pipeline_mode<synchronous>, transform_indices = @transform_6, window_bounds = array<i64: 1, 1>}, {transform_indices = @transform_7, window_bounds = array<i64: 1, 128>}]} {
    %c0 = arith.constant 0 : index
    %c0_0 = arith.constant 0 : index
    %0 = vector.load %arg1[%c0, %c0_0] : memref<8x128xf32, #tpu.memory_space<vmem>>, vector<8x128xf32>
    %c0_1 = arith.constant 0 : index
    %c0_2 = arith.constant 0 : index
    %1 = vector.load %arg2[%c0_1, %c0_2] : memref<6x8xf32, #tpu.memory_space<vmem>>, vector<6x8xf32>
    %c0_3 = arith.constant 0 : index
    %c0_4 = arith.constant 0 : index
    %2 = vector.load %arg3[%c0_3, %c0_4] : memref<6x1xf32, #tpu.memory_space<vmem>>, vector<6x1xf32>
    %3 = vector.shape_cast %2 : vector<6x1xf32> to vector<6x1xf32>
    %4 = vector.broadcast %3 : vector<6x1xf32> to vector<6x128xf32>
    %5 = vector.extract_strided_slice %1 {offsets = [0, 0], sizes = [6, 1], strides = [1, 1]} : vector<6x8xf32> to vector<6x1xf32>
    %6 = vector.extract_strided_slice %0 {offsets = [0, 0], sizes = [1, 128], strides = [1, 1]} : vector<8x128xf32> to vector<1x128xf32>
    %7 = vector.broadcast %5 : vector<6x1xf32> to vector<6x128xf32>
    %8 = vector.broadcast %6 : vector<1x128xf32> to vector<6x128xf32>
    %9 = arith.mulf %7, %8 : vector<6x128xf32>
    %10 = arith.addf %4, %9 : vector<6x128xf32>
    %11 = vector.extract_strided_slice %1 {offsets = [0, 1], sizes = [6, 1], strides = [1, 1]} : vector<6x8xf32> to vector<6x1xf32>
    %12 = vector.extract_strided_slice %0 {offsets = [1, 0], sizes = [1, 128], strides = [1, 1]} : vector<8x128xf32> to vector<1x128xf32>
    %13 = vector.broadcast %11 : vector<6x1xf32> to vector<6x128xf32>
    %14 = vector.broadcast %12 : vector<1x128xf32> to vector<6x128xf32>
    %15 = arith.mulf %13, %14 : vector<6x128xf32>
    %16 = arith.addf %10, %15 : vector<6x128xf32>
    %17 = vector.extract_strided_slice %1 {offsets = [0, 2], sizes = [6, 1], strides = [1, 1]} : vector<6x8xf32> to vector<6x1xf32>
    %18 = vector.extract_strided_slice %0 {offsets = [2, 0], sizes = [1, 128], strides = [1, 1]} : vector<8x128xf32> to vector<1x128xf32>
    %19 = vector.broadcast %17 : vector<6x1xf32> to vector<6x128xf32>
    %20 = vector.broadcast %18 : vector<1x128xf32> to vector<6x128xf32>
    %21 = arith.mulf %19, %20 : vector<6x128xf32>
    %22 = arith.addf %16, %21 : vector<6x128xf32>
    %23 = vector.extract_strided_slice %1 {offsets = [0, 3], sizes = [6, 1], strides = [1, 1]} : vector<6x8xf32> to vector<6x1xf32>
    %24 = vector.extract_strided_slice %0 {offsets = [3, 0], sizes = [1, 128], strides = [1, 1]} : vector<8x128xf32> to vector<1x128xf32>
    %25 = vector.broadcast %23 : vector<6x1xf32> to vector<6x128xf32>
    %26 = vector.broadcast %24 : vector<1x128xf32> to vector<6x128xf32>
    %27 = arith.mulf %25, %26 : vector<6x128xf32>
    %28 = arith.addf %22, %27 : vector<6x128xf32>
    %29 = vector.extract_strided_slice %1 {offsets = [0, 4], sizes = [6, 1], strides = [1, 1]} : vector<6x8xf32> to vector<6x1xf32>
    %30 = vector.extract_strided_slice %0 {offsets = [4, 0], sizes = [1, 128], strides = [1, 1]} : vector<8x128xf32> to vector<1x128xf32>
    %31 = vector.broadcast %29 : vector<6x1xf32> to vector<6x128xf32>
    %32 = vector.broadcast %30 : vector<1x128xf32> to vector<6x128xf32>
    %33 = arith.mulf %31, %32 : vector<6x128xf32>
    %34 = arith.addf %28, %33 : vector<6x128xf32>
    %35 = vector.extract_strided_slice %1 {offsets = [0, 5], sizes = [6, 1], strides = [1, 1]} : vector<6x8xf32> to vector<6x1xf32>
    %36 = vector.extract_strided_slice %0 {offsets = [5, 0], sizes = [1, 128], strides = [1, 1]} : vector<8x128xf32> to vector<1x128xf32>
    %37 = vector.broadcast %35 : vector<6x1xf32> to vector<6x128xf32>
    %38 = vector.broadcast %36 : vector<1x128xf32> to vector<6x128xf32>
    %39 = arith.mulf %37, %38 : vector<6x128xf32>
    %40 = arith.addf %34, %39 : vector<6x128xf32>
    %41 = vector.extract_strided_slice %1 {offsets = [0, 6], sizes = [6, 1], strides = [1, 1]} : vector<6x8xf32> to vector<6x1xf32>
    %42 = vector.extract_strided_slice %0 {offsets = [6, 0], sizes = [1, 128], strides = [1, 1]} : vector<8x128xf32> to vector<1x128xf32>
    %43 = vector.broadcast %41 : vector<6x1xf32> to vector<6x128xf32>
    %44 = vector.broadcast %42 : vector<1x128xf32> to vector<6x128xf32>
    %45 = arith.mulf %43, %44 : vector<6x128xf32>
    %46 = arith.addf %40, %45 : vector<6x128xf32>
    %47 = vector.extract_strided_slice %1 {offsets = [0, 7], sizes = [6, 1], strides = [1, 1]} : vector<6x8xf32> to vector<6x1xf32>
    %48 = vector.extract_strided_slice %0 {offsets = [7, 0], sizes = [1, 128], strides = [1, 1]} : vector<8x128xf32> to vector<1x128xf32>
    %49 = vector.broadcast %47 : vector<6x1xf32> to vector<6x128xf32>
    %50 = vector.broadcast %48 : vector<1x128xf32> to vector<6x128xf32>
    %51 = arith.mulf %49, %50 : vector<6x128xf32>
    %52 = arith.addf %46, %51 : vector<6x128xf32>
    %53 = arith.negf %52 : vector<6x128xf32>
    %54 = math.exp %53 : vector<6x128xf32>
    %cst = arith.constant 1.000000e+00 : f32
    %55 = vector.broadcast %cst : f32 to vector<6x128xf32>
    %56 = arith.addf %55, %54 : vector<6x128xf32>
    %57 = arith.divf %55, %56 : vector<6x128xf32>
    %c0_5 = arith.constant 0 : index
    %c0_6 = arith.constant 0 : index
    %58 = vector.load %arg4[%c0_5, %c0_6] : memref<4x6xf32, #tpu.memory_space<vmem>>, vector<4x6xf32>
    %c0_7 = arith.constant 0 : index
    %c0_8 = arith.constant 0 : index
    %59 = vector.load %arg5[%c0_7, %c0_8] : memref<4x1xf32, #tpu.memory_space<vmem>>, vector<4x1xf32>
    %60 = vector.shape_cast %59 : vector<4x1xf32> to vector<4x1xf32>
    %61 = vector.broadcast %60 : vector<4x1xf32> to vector<4x128xf32>
    %62 = vector.extract_strided_slice %58 {offsets = [0, 0], sizes = [4, 1], strides = [1, 1]} : vector<4x6xf32> to vector<4x1xf32>
    %63 = vector.extract_strided_slice %57 {offsets = [0, 0], sizes = [1, 128], strides = [1, 1]} : vector<6x128xf32> to vector<1x128xf32>
    %64 = vector.broadcast %62 : vector<4x1xf32> to vector<4x128xf32>
    %65 = vector.broadcast %63 : vector<1x128xf32> to vector<4x128xf32>
    %66 = arith.mulf %64, %65 : vector<4x128xf32>
    %67 = arith.addf %61, %66 : vector<4x128xf32>
    %68 = vector.extract_strided_slice %58 {offsets = [0, 1], sizes = [4, 1], strides = [1, 1]} : vector<4x6xf32> to vector<4x1xf32>
    %69 = vector.extract_strided_slice %57 {offsets = [1, 0], sizes = [1, 128], strides = [1, 1]} : vector<6x128xf32> to vector<1x128xf32>
    %70 = vector.broadcast %68 : vector<4x1xf32> to vector<4x128xf32>
    %71 = vector.broadcast %69 : vector<1x128xf32> to vector<4x128xf32>
    %72 = arith.mulf %70, %71 : vector<4x128xf32>
    %73 = arith.addf %67, %72 : vector<4x128xf32>
    %74 = vector.extract_strided_slice %58 {offsets = [0, 2], sizes = [4, 1], strides = [1, 1]} : vector<4x6xf32> to vector<4x1xf32>
    %75 = vector.extract_strided_slice %57 {offsets = [2, 0], sizes = [1, 128], strides = [1, 1]} : vector<6x128xf32> to vector<1x128xf32>
    %76 = vector.broadcast %74 : vector<4x1xf32> to vector<4x128xf32>
    %77 = vector.broadcast %75 : vector<1x128xf32> to vector<4x128xf32>
    %78 = arith.mulf %76, %77 : vector<4x128xf32>
    %79 = arith.addf %73, %78 : vector<4x128xf32>
    %80 = vector.extract_strided_slice %58 {offsets = [0, 3], sizes = [4, 1], strides = [1, 1]} : vector<4x6xf32> to vector<4x1xf32>
    %81 = vector.extract_strided_slice %57 {offsets = [3, 0], sizes = [1, 128], strides = [1, 1]} : vector<6x128xf32> to vector<1x128xf32>
    %82 = vector.broadcast %80 : vector<4x1xf32> to vector<4x128xf32>
    %83 = vector.broadcast %81 : vector<1x128xf32> to vector<4x128xf32>
    %84 = arith.mulf %82, %83 : vector<4x128xf32>
    %85 = arith.addf %79, %84 : vector<4x128xf32>
    %86 = vector.extract_strided_slice %58 {offsets = [0, 4], sizes = [4, 1], strides = [1, 1]} : vector<4x6xf32> to vector<4x1xf32>
    %87 = vector.extract_strided_slice %57 {offsets = [4, 0], sizes = [1, 128], strides = [1, 1]} : vector<6x128xf32> to vector<1x128xf32>
    %88 = vector.broadcast %86 : vector<4x1xf32> to vector<4x128xf32>
    %89 = vector.broadcast %87 : vector<1x128xf32> to vector<4x128xf32>
    %90 = arith.mulf %88, %89 : vector<4x128xf32>
    %91 = arith.addf %85, %90 : vector<4x128xf32>
    %92 = vector.extract_strided_slice %58 {offsets = [0, 5], sizes = [4, 1], strides = [1, 1]} : vector<4x6xf32> to vector<4x1xf32>
    %93 = vector.extract_strided_slice %57 {offsets = [5, 0], sizes = [1, 128], strides = [1, 1]} : vector<6x128xf32> to vector<1x128xf32>
    %94 = vector.broadcast %92 : vector<4x1xf32> to vector<4x128xf32>
    %95 = vector.broadcast %93 : vector<1x128xf32> to vector<4x128xf32>
    %96 = arith.mulf %94, %95 : vector<4x128xf32>
    %97 = arith.addf %91, %96 : vector<4x128xf32>
    %98 = arith.negf %97 : vector<4x128xf32>
    %99 = math.exp %98 : vector<4x128xf32>
    %cst_9 = arith.constant 1.000000e+00 : f32
    %100 = vector.broadcast %cst_9 : f32 to vector<4x128xf32>
    %101 = arith.addf %100, %99 : vector<4x128xf32>
    %102 = arith.divf %100, %101 : vector<4x128xf32>
    %c0_10 = arith.constant 0 : index
    %c0_11 = arith.constant 0 : index
    %103 = vector.load %arg6[%c0_10, %c0_11] : memref<1x4xf32, #tpu.memory_space<vmem>>, vector<1x4xf32>
    %c0_12 = arith.constant 0 : index
    %c0_13 = arith.constant 0 : index
    %104 = vector.load %arg7[%c0_12, %c0_13] : memref<1x1xf32, #tpu.memory_space<vmem>>, vector<1x1xf32>
    %105 = vector.shape_cast %104 : vector<1x1xf32> to vector<1x1xf32>
    %106 = vector.broadcast %105 : vector<1x1xf32> to vector<1x128xf32>
    %107 = vector.extract_strided_slice %103 {offsets = [0, 0], sizes = [1, 1], strides = [1, 1]} : vector<1x4xf32> to vector<1x1xf32>
    %108 = vector.extract_strided_slice %102 {offsets = [0, 0], sizes = [1, 128], strides = [1, 1]} : vector<4x128xf32> to vector<1x128xf32>
    %109 = vector.broadcast %107 : vector<1x1xf32> to vector<1x128xf32>
    %110 = arith.mulf %109, %108 : vector<1x128xf32>
    %111 = arith.addf %106, %110 : vector<1x128xf32>
    %112 = vector.extract_strided_slice %103 {offsets = [0, 1], sizes = [1, 1], strides = [1, 1]} : vector<1x4xf32> to vector<1x1xf32>
    %113 = vector.extract_strided_slice %102 {offsets = [1, 0], sizes = [1, 128], strides = [1, 1]} : vector<4x128xf32> to vector<1x128xf32>
    %114 = vector.broadcast %112 : vector<1x1xf32> to vector<1x128xf32>
    %115 = arith.mulf %114, %113 : vector<1x128xf32>
    %116 = arith.addf %111, %115 : vector<1x128xf32>
    %117 = vector.extract_strided_slice %103 {offsets = [0, 2], sizes = [1, 1], strides = [1, 1]} : vector<1x4xf32> to vector<1x1xf32>
    %118 = vector.extract_strided_slice %102 {offsets = [2, 0], sizes = [1, 128], strides = [1, 1]} : vector<4x128xf32> to vector<1x128xf32>
    %119 = vector.broadcast %117 : vector<1x1xf32> to vector<1x128xf32>
    %120 = arith.mulf %119, %118 : vector<1x128xf32>
    %121 = arith.addf %116, %120 : vector<1x128xf32>
    %122 = vector.extract_strided_slice %103 {offsets = [0, 3], sizes = [1, 1], strides = [1, 1]} : vector<1x4xf32> to vector<1x1xf32>
    %123 = vector.extract_strided_slice %102 {offsets = [3, 0], sizes = [1, 128], strides = [1, 1]} : vector<4x128xf32> to vector<1x128xf32>
    %124 = vector.broadcast %122 : vector<1x1xf32> to vector<1x128xf32>
    %125 = arith.mulf %124, %123 : vector<1x128xf32>
    %126 = arith.addf %121, %125 : vector<1x128xf32>
    %127 = arith.negf %126 : vector<1x128xf32>
    %128 = math.exp %127 : vector<1x128xf32>
    %cst_14 = arith.constant 1.000000e+00 : f32
    %129 = vector.broadcast %cst_14 : f32 to vector<1x128xf32>
    %130 = arith.addf %129, %128 : vector<1x128xf32>
    %131 = arith.divf %129, %130 : vector<1x128xf32>
    %c0_15 = arith.constant 0 : index
    %c0_16 = arith.constant 0 : index
    %132 = vector.load %arg8[%c0_15, %c0_16] : memref<1x128xf32, #tpu.memory_space<vmem>>, vector<1x128xf32>
    tpu.vector_store %arg8[%c0_15, %c0_16], %131 {strides = array<i32>} : memref<1x128xf32, #tpu.memory_space<vmem>>, vector<1x128xf32>,
    return
  }
  func.func @transform_0(%arg0: i32) -> (i32, i32) {
    %c0_i32 = arith.constant 0 : i32
    %c0_i32_0 = arith.constant 0 : i32
    return %c0_i32, %arg0 : i32, i32
  }
  func.func @transform_1(%arg0: i32) -> (i32, i32) {
    %c0_i32 = arith.constant 0 : i32
    %c0_i32_0 = arith.constant 0 : i32
    %c0_i32_1 = arith.constant 0 : i32
    return %c0_i32, %c0_i32_0 : i32, i32
  }
  func.func @transform_2(%arg0: i32) -> (i32, i32) {
    %c0_i32 = arith.constant 0 : i32
    %c0_i32_0 = arith.constant 0 : i32
    %c0_i32_1 = arith.constant 0 : i32
    return %c0_i32, %c0_i32_0 : i32, i32
  }
  func.func @transform_3(%arg0: i32) -> (i32, i32) {
    %c0_i32 = arith.constant 0 : i32
    %c0_i32_0 = arith.constant 0 : i32
    %c0_i32_1 = arith.constant 0 : i32
    return %c0_i32, %c0_i32_0 : i32, i32
  }
  func.func @transform_4(%arg0: i32) -> (i32, i32) {
    %c0_i32 = arith.constant 0 : i32
    %c0_i32_0 = arith.constant 0 : i32
    %c0_i32_1 = arith.constant 0 : i32
    return %c0_i32, %c0_i32_0 : i32, i32
  }
  func.func @transform_5(%arg0: i32) -> (i32, i32) {
    %c0_i32 = arith.constant 0 : i32
    %c0_i32_0 = arith.constant 0 : i32
    %c0_i32_1 = arith.constant 0 : i32
    return %c0_i32, %c0_i32_0 : i32, i32
  }
  func.func @transform_6(%arg0: i32) -> (i32, i32) {
    %c0_i32 = arith.constant 0 : i32
    %c0_i32_0 = arith.constant 0 : i32
    %c0_i32_1 = arith.constant 0 : i32
    return %c0_i32, %c0_i32_0 : i32, i32
  }
  func.func @transform_7(%arg0: i32) -> (i32, i32) {
    %c0_i32 = arith.constant 0 : i32
    %c0_i32_0 = arith.constant 0 : i32
    return %c0_i32, %arg0 : i32, i32
  }
}

</mosaic_0001>

<bundles_post_ra>
// kernel: tpu_custom_call.1
= control target key start
LH: loop header
LB: loop body
LE: loop exit
PB: predicated region body
PF: predicated region fallthrough
CT: control target
= control target key end

     0   :  { %s451_s0 = inlined_call_operand.vmem [shape: f32[8,128], index: 0, kind: input, shape index: {}]   ;;  %s452_s1 = inlined_call_operand.vmem [shape: f32[6,8], index: 1, kind: input, shape index: {}]   ;;  %s453_s2 = inlined_call_operand.vmem [shape: f32[6,1], index: 2, kind: input, shape index: {}]   ;;  %s454_s3 = inlined_call_operand.hbm [shape: f32[4,6], index: 3, kind: input, shape index: {}]   ;;  %s455_s4 = inlined_call_operand.vmem [shape: f32[4,1], index: 4, kind: input, shape index: {}]   ;;  %s456_s5 = inlined_call_operand.vmem [shape: f32[1,4], index: 5, kind: input, shape index: {}]   ;;  %s457_s6 = inlined_call_operand.<no memory space> [shape: f32[1,1], index: 6, kind: input, shape index: {}]   ;;  %s458_s7 = inlined_call_operand.hbm [shape: f32[1,128], index: 7, kind: output, shape index: {}]  }
   0x1   :  { %v12_v0 = vstv %s457_s6 }
   0x2   :  { %13 = vst [vmem:[#allocation2] sm:$0x1] %v12_v0 }
   0x3   :  { %14 = vsyncpa [#allocation4], 0 }
   0x4   :  { %15 = vsyncpa [#allocation5], 0  ;;  %s27_s28 = sshll.u32 %s454_s3, 4  ;;  %s377_s29 = smov [#allocation3]   ;;  %s28_s28 = int_to_ptr.hbm [resolvable:$true] %s27_s28 }
   0x5   :  { %s29_s30 = sshll.u32 %s377_s29, 4  ;;  %s30_s30 = int_to_ptr.vmem [resolvable:$true] %s29_s30 }
   0x6   :  { %32 = dma.hbm_to_vmem [thread:$0]  %s28_s28, 64, %s30_s30, [#allocation4]  }
   0x7   :  { %373 = dma.done.wait [#allocation4], 64  }
   0x8   :  { %374 = vsyncadd [#allocation4], 4294967232  ;;  %v378_v1 = vmov 0   ;;  %v379_v2 = vmov 1   ;;  %v380_v3 = vmov 3   ;;  %v381_v6 = vmov 2  }
   0x9   :  { %292 = vset.pattern.permute.xlu0 %v378_v1  ;;  %293 = vset.pattern.permute.xlu1 %v379_v2  ;;  %v44_v4 = vld [vmem:[%s452_s1] sm:$0x3f]  ;;  %v382_v7 = vmov 4   ;;  %v383_v8 = vmov 5   ;;  %v384_v9 = vmov 6   ;;  %v385_v10 = vmov 7  }
   0xa   :  { %295 = vset.pattern.permute.xlu2 %v380_v3  ;;  %53 = vperm.xlu0 %292, %v44_v4   ;;  %v45_v5 = vld [vmem:[%s453_s2] sm:$0x3f]  ;;  %s269_s15 = sshll.u32 %s458_s7, 4  ;;  %s270_s15 = int_to_ptr.hbm [resolvable:$true] %s269_s15 }
   0xb   :  { %60 = vperm.xlu1 %293, %v44_v4   ;;  %74 = vperm.xlu2 %295, %v44_v4   ;;  %v127_v11 = vld [vmem:[#allocation3] sm:$0xf]  ;;  %v196_v13 = vld [vmem:[%s456_s5] sm:$0x1] }
   0xc   :  { %v128_v12 = vld [vmem:[%s455_s4] sm:$0xf] }
   0xd   :  { %v197_v14 = vld [vmem:[#allocation2] sm:$0x1] }
   0xe   :  { %v43_v17 = vld [vmem:[%s451_s0] sm:$0xff]  ;;  %s386_s0 = smov [#allocation6]  }
   0xf   :  { %v56_v19 = vperm.slane %v43_v17, 0  ;;  %v63_v20 = vperm.slane %v43_v17, 1  ;;  %v70_v21 = vperm.slane %v43_v17, 2  ;;  %v77_v26 = vperm.slane %v43_v17, 3  ;;  %s267_s12 = sshll.u32 %s386_s0, 4  ;;  %s268_s12 = int_to_ptr.vmem [resolvable:$true] %s267_s12 }
  0x10   :  { %v84_v31 = vperm.slane %v43_v17, 4  ;;  %v91_v34 = vperm.slane %v43_v17, 5  ;;  %v98_v37 = vperm.slane %v43_v17, 6  ;;  %v105_v38 = vperm.slane %v43_v17, 7 }
  0x12   :  { %48 = vperm.xlu0 %292, %v45_v5  }
  0x13   :  { %294 = vset.pattern.permute.xlu1 %v381_v6  ;;  %296 = vset.pattern.permute.xlu2 %v382_v7 }
  0x14   :  { %67 = vperm.xlu1 %294, %v44_v4   ;;  %81 = vperm.xlu2 %296, %v44_v4  }
  0x1a   :  { %297 = vset.pattern.permute.xlu0 %v383_v8 }
  0x1b   :  { %88 = vperm.xlu0 %297, %v44_v4  }
  0x1c   :  { %298 = vset.pattern.permute.xlu1 %v384_v9  ;;  %299 = vset.pattern.permute.xlu2 %v385_v10 }
  0x1d   :  { %95 = vperm.xlu1 %298, %v44_v4   ;;  %102 = vperm.xlu2 %299, %v44_v4  }
  0x23   :  { %302 = vset.pattern.permute.xlu0 %v379_v2 }
  0x24   :  { %143 = vperm.xlu0 %302, %v127_v11  }
  0x25   :  { %300 = vset.pattern.permute.xlu1 %v378_v1  ;;  %301 = vset.pattern.permute.xlu2 %v378_v1 }
  0x26   :  { %136 = vperm.xlu1 %300, %v127_v11   ;;  %131 = vperm.xlu2 %301, %v128_v12  }
  0x2c   :  { %307 = vset.pattern.permute.xlu0 %v378_v1 }
  0x2d   :  { %206 = vperm.xlu0 %307, %v196_v13  }
  0x2e   :  { %303 = vset.pattern.permute.xlu1 %v381_v6  ;;  %304 = vset.pattern.permute.xlu2 %v380_v3 }
  0x2f   :  { %150 = vperm.xlu1 %303, %v127_v11   ;;  %157 = vperm.xlu2 %304, %v127_v11  }
  0x35   :  { %312 = vset.pattern.permute.xlu0 %v380_v3 }
  0x37   :  { %305 = vset.pattern.permute.xlu1 %v382_v7  ;;  %306 = vset.pattern.permute.xlu2 %v383_v8 }
  0x38   :  { %164 = vperm.xlu1 %305, %v127_v11   ;;  %171 = vperm.xlu2 %306, %v127_v11  }
  0x40   :  { %308 = vset.pattern.permute.xlu1 %v379_v2  ;;  %309 = vset.pattern.permute.xlu2 %v378_v1 }
  0x41   :  { %213 = vperm.xlu1 %308, %v196_v13   ;;  %200 = vperm.xlu2 %309, %v197_v14  }
  0x49   :  { %310 = vset.pattern.permute.xlu1 %v381_v6  ;;  %311 = vset.pattern.permute.xlu2 %v380_v3 }
  0x4a   :  { %223 = vperm.xlu1 %310, %v196_v13   ;;  %233 = vperm.xlu2 %311, %v196_v13  }
  0x65   :  { %v75_v15 = vpop.permute.xlu2 %74 }
  0x66   :  { %v78_v32 = vmul.f32 %v77_v26, %v75_v15 }
  0x6e   :  { %v82_v23 = vpop.permute.xlu2 %81 }
  0x6f   :  { %v85_v36 = vmul.f32 %v84_v31, %v82_v23 }
  0x77   :  { %v103_v41 = vpop.permute.xlu2 %102 }
  0x78   :  { %v106_v46 = vmul.f32 %v105_v38, %v103_v41 }
  0x7c   :  { %v54_v16 = vpop.permute.xlu0 %53 }
  0x7d   :  { %v61_v18 = vpop.permute.xlu1 %60  ;;  %v57_v22 = vmul.f32 %v56_v19, %v54_v16 }
  0x7e   :  { %v64_v25 = vmul.f32 %v63_v20, %v61_v18 }
  0x80   :  { %v132_v54 = vpop.permute.xlu2 %131 }
  0x84   :  { %v49_v24 = vpop.permute.xlu0 %48 }
  0x85   :  { %v58_v27 = vadd.f32 %v57_v22, %v49_v24 }
  0x86   :  { %v68_v28 = vpop.permute.xlu1 %67 }
  0x87   :  { %v71_v29 = vmul.f32 %v70_v21, %v68_v28  ;;  %v65_v30 = vadd.f32 %v64_v25, %v58_v27 }
  0x89   :  { %v72_v33 = vadd.f32 %v71_v29, %v65_v30  ;;  %v158_v1 = vpop.permute.xlu2 %157 }
  0x8b   :  { %v79_v35 = vadd.f32 %v78_v32, %v72_v33 }
  0x8d   :  { %v86_v39 = vadd.f32 %v85_v36, %v79_v35  ;;  %v89_v40 = vpop.permute.xlu0 %88 }
  0x8e   :  { %v92_v42 = vmul.f32 %v91_v34, %v89_v40 }
  0x8f   :  { %v96_v43 = vpop.permute.xlu1 %95 }
  0x90   :  { %v99_v44 = vmul.f32 %v98_v37, %v96_v43  ;;  %v93_v45 = vadd.f32 %v92_v42, %v86_v39 }
  0x92   :  { %v100_v47 = vadd.f32 %v99_v44, %v93_v45  ;;  %v172_v17 = vpop.permute.xlu2 %171 }
  0x94   :  { %v107_v48 = vadd.f32 %v106_v46, %v100_v47 }
  0x96   :  { %v279_v49 = vmul.f32 -1.442695, %v107_v48  ;;  %v144_v3 = vpop.permute.xlu0 %143 }
  0x98   :  { %313 = vpow2.f32 %v279_v49  ;;  %v137_v52 = vpop.permute.xlu1 %136 }
  0x9b   :  { %v201_v27 = vpop.permute.xlu2 %200 }
  0x9c   :  { %v203_v45 = vperm.slane %v201_v27, 0 }
  0x9e   :  { %v314_v50 = vpop.eup %313 }
  0x9f   :  { %v111_v51 = vadd.f32 1.0, %v314_v50  ;;  %v207_v33 = vpop.permute.xlu0 %206 }
  0xa0   :  { %v209_v39 = vperm.slane %v207_v33, 0 }
  0xa1   :  { %315 = vrcp.f32 %v111_v51  ;;  %v123_v57 = vand.u32 2147483648, %v111_v51  ;;  %v121_v59 = vand.u32 2147483647, %v111_v51  ;;  %vm117_vm1 = vweird.f32 %v111_v51  ;;  %v151_v62 = vpop.permute.xlu1 %150 }
  0xa3   :  { %v124_v61 = vor.u32 1.1754944e-38, %v123_v57  ;;  %vm122_vm3 = vcmp.eq.f32.partialorder %v121_v59, 8.507059e+37 }
  0xa4   :  { %v234_v36 = vpop.permute.xlu2 %233 }
  0xa5   :  { %v236_v43 = vperm.slane %v234_v36, 0 }
  0xa7   :  { %v316_v53 = vpop.eup %315 }
  0xa8   :  { %v113_v55 = vmul.f32 %v316_v53, %v111_v51  ;;  %vm118_vm0 = vweird.f32 %v316_v53 }
  0xa9   :  { %vm119_vm2 = vmor %vm117_vm1, %vm118_vm0 }
  0xaa   :  { %v114_v56 = vsub.f32 1.0, %v113_v55  ;;  %v165_v13 = vpop.permute.xlu1 %164 }
  0xac   :  { %v115_v58 = vmul.f32 %v316_v53, %v114_v56 }
  0xae   :  { %v116_v60 = vadd.f32 %v316_v53, %v115_v58 }
  0xb0   :  { %v120_v63 = vsel %vm119_vm2, %v316_v53, %v116_v60 }
  0xb1   :  { %v125_v0 = vsel %vm122_vm3, %v124_v61, %v120_v63 }
  0xb2   :  { %v139_v2 = vperm.slane %v125_v0, 0  ;;  %v146_v4 = vperm.slane %v125_v0, 1  ;;  %v153_v6 = vperm.slane %v125_v0, 2  ;;  %v160_v8 = vperm.slane %v125_v0, 3 }
  0xb3   :  { %v167_v11 = vperm.slane %v125_v0, 4  ;;  %v174_v15 = vperm.slane %v125_v0, 5  ;;  %v214_v26 = vpop.permute.xlu1 %213 }
  0xb4   :  { %v140_v5 = vmul.f32 %v139_v2, %v137_v52  ;;  %v147_v9 = vmul.f32 %v146_v4, %v144_v3  ;;  %v154_v10 = vmul.f32 %v153_v6, %v151_v62  ;;  %v161_v14 = vmul.f32 %v160_v8, %v158_v1 }
  0xb5   :  { %v168_v18 = vmul.f32 %v167_v11, %v165_v13  ;;  %v175_v20 = vmul.f32 %v174_v15, %v172_v17  ;;  %v216_v42 = vperm.slane %v214_v26, 0 }
  0xb6   :  { %v141_v7 = vadd.f32 %v140_v5, %v132_v54 }
  0xb8   :  { %v148_v12 = vadd.f32 %v147_v9, %v141_v7 }
  0xba   :  { %v155_v16 = vadd.f32 %v154_v10, %v148_v12 }
  0xbc   :  { %v162_v19 = vadd.f32 %v161_v14, %v155_v16  ;;  %v224_v32 = vpop.permute.xlu1 %223 }
  0xbd   :  { %v226_v38 = vperm.slane %v224_v32, 0 }
  0xbe   :  { %v169_v21 = vadd.f32 %v168_v18, %v162_v19 }
  0xc0   :  { %v176_v22 = vadd.f32 %v175_v20, %v169_v21 }
  0xc2   :  { %v280_v23 = vmul.f32 -1.442695, %v176_v22 }
  0xc4   :  { %317 = vpow2.f32 %v280_v23 }
  0xca   :  { %v318_v24 = vpop.eup %317 }
  0xcb   :  { %v180_v25 = vadd.f32 1.0, %v318_v24 }
  0xcd   :  { %319 = vrcp.f32 %v180_v25  ;;  %v192_v31 = vand.u32 2147483648, %v180_v25  ;;  %v190_v35 = vand.u32 2147483647, %v180_v25  ;;  %vm186_vm5 = vweird.f32 %v180_v25 }
  0xcf   :  { %v193_v40 = vor.u32 1.1754944e-38, %v192_v31  ;;  %vm191_vm7 = vcmp.eq.f32.partialorder %v190_v35, 8.507059e+37 }
  0xd3   :  { %v320_v28 = vpop.eup %319 }
  0xd4   :  { %v182_v29 = vmul.f32 %v320_v28, %v180_v25  ;;  %vm187_vm4 = vweird.f32 %v320_v28 }
  0xd5   :  { %vm188_vm6 = vmor %vm186_vm5, %vm187_vm4 }
  0xd6   :  { %v183_v30 = vsub.f32 1.0, %v182_v29 }
  0xd8   :  { %v184_v34 = vmul.f32 %v320_v28, %v183_v30 }
  0xda   :  { %v185_v37 = vadd.f32 %v320_v28, %v184_v34 }
  0xdc   :  { %v189_v41 = vsel %vm188_vm6, %v320_v28, %v185_v37 }
  0xdd   :  { %v194_v44 = vsel %vm191_vm7, %v193_v40, %v189_v41 }
  0xde   :  { %v217_v46 = vmul.f32 %v216_v42, %v194_v44  ;;  %v227_v47 = vmul.f32 %v226_v38, %v194_v44  ;;  %v210_v48 = vmul.f32 %v209_v39, %v194_v44  ;;  %v237_v50 = vmul.f32 %v236_v43, %v194_v44 }
  0xe0   :  { %v219_v49 = vrot.slane %v217_v46, 1  ;;  %v211_v51 = vadd.f32 %v210_v48, %v203_v45  ;;  %v229_v52 = vrot.slane %v227_v47, 2  ;;  %v239_v54 = vrot.slane %v237_v50, 3 }
  0xe2   :  { %v221_v53 = vadd.f32 %v219_v49, %v211_v51 }
  0xe4   :  { %v231_v55 = vadd.f32 %v229_v52, %v221_v53 }
  0xe6   :  { %v241_v56 = vadd.f32 %v239_v54, %v231_v55 }
  0xe8   :  { %v281_v57 = vmul.f32 -1.442695, %v241_v56 }
  0xea   :  { %321 = vpow2.f32 %v281_v57 }
  0xf0   :  { %v322_v58 = vpop.eup %321 }
  0xf1   :  { %v245_v59 = vadd.f32 1.0, %v322_v58 }
  0xf3   :  { %323 = vrcp.f32 %v245_v59  ;;  %v257_v63 = vand.u32 2147483648, %v245_v59  ;;  %v255_v1 = vand.u32 2147483647, %v245_v59  ;;  %vm251_vm9 = vweird.f32 %v245_v59 }
  0xf5   :  { %v258_v3 = vor.u32 1.1754944e-38, %v257_v63  ;;  %vm256_vm11 = vcmp.eq.f32.partialorder %v255_v1, 8.507059e+37 }
  0xf9   :  { %v324_v60 = vpop.eup %323 }
  0xfa   :  { %v247_v61 = vmul.f32 %v324_v60, %v245_v59  ;;  %vm252_vm8 = vweird.f32 %v324_v60 }
  0xfb   :  { %vm253_vm10 = vmor %vm251_vm9, %vm252_vm8 }
  0xfc   :  { %v248_v62 = vsub.f32 1.0, %v247_v61 }
  0xfe   :  { %v249_v0 = vmul.f32 %v324_v60, %v248_v62 }
 0x100   :  { %v250_v2 = vadd.f32 %v324_v60, %v249_v0 }
 0x102   :  { %v254_v4 = vsel %vm253_vm10, %v324_v60, %v250_v2 }
 0x103   :  { %v259_v5 = vsel %vm256_vm11, %v258_v3, %v254_v4 }
 0x104   :  { %261 = vst [vmem:[#allocation6] sm:$0x1] %v259_v5 }
 0x105   :  { %272 = dma.vmem_to_hbm [thread:$0]  %s268_s12, 16, %s270_s15, [#allocation5]  }
 0x106   :  { %375 = dma.done.wait [#allocation5], 16  }
 0x107   :  { %376 = vsyncadd [#allocation5], 4294967280 }
 0x108   :  { %277 = vsyncpa [#allocation4], 1 }
 0x109   :  { %278 = vsyncpa [#allocation5], 1 }

</bundles_post_ra>
